<compile_context>
chip_gen: v7x
topology: tpu7x:2x2x1
jax: 0.10.0
libtpu: 0.0.40
codegen_flags: <defaults>
</compile_context>

<pallas_src>
import functools

import jax
import jax.numpy as jnp
from jax.experimental import pallas as pl
from jax.experimental.pallas import tpu as pltpu

IN_DIM = 70      # nn.Linear(70, 512) input features
HID = 512
OUT_DIM = 1      # nn.Linear(512, 1) output features


def mlp_kernel(x_ref, w1_ref, b1_ref, w2_ref, b2_ref, w3_ref, b3_ref, o_ref):
    """Fused 3-layer MLP for one batch tile; weights stay resident in VMEM."""
    # Layer 1: bf16 MXU operands, f32 accumulation; bias + ReLU in f32.
    x = x_ref[...].astype(jnp.bfloat16)                               # (TB, 70)
    h1 = jnp.dot(x, w1_ref[...], preferred_element_type=jnp.float32)  # (TB, 512) f32
    h1 = jnp.maximum(h1 + b1_ref[...], 0.0).astype(jnp.bfloat16)      # downcast for next MXU op

    # Layer 2: bf16 MXU operands, f32 accumulation; bias + ReLU in f32.
    h2 = jnp.dot(h1, w2_ref[...], preferred_element_type=jnp.float32)
    h2 = jnp.maximum(h2 + b2_ref[...], 0.0)                           # keep f32 for final reduce

    # Layer 3 (single real output column): VPU multiply + lane reduce in f32
    # instead of a padded (TB,128) MXU matmul + padded HBM writeback.
    o_ref[...] = jnp.sum(h2 * w3_ref[...], axis=-1, keepdims=True) + b3_ref[...]


def init_params(key):
    """PyTorch-default-style init: U(-1/sqrt(fan_in), 1/sqrt(fan_in))."""
    ks = jax.random.split(key, 6)

    def lin(kw, kb, fan_in, fan_out):
        bound = 1.0 / jnp.sqrt(jnp.float32(fan_in))
        w = jax.random.uniform(kw, (fan_in, fan_out), jnp.float32, -bound, bound)
        b = jax.random.uniform(kb, (1, fan_out), jnp.float32, -bound, bound)
        return w, b

    w1, b1 = lin(ks[0], ks[1], IN_DIM, HID)
    w2, b2 = lin(ks[2], ks[3], HID, HID)
    w3, b3 = lin(ks[4], ks[5], HID, OUT_DIM)
    return w1, b1, w2, b2, w3, b3


def prep_params(params):
    """One-time param prep: bf16 MXU weights, f32 biases, w3 as an f32 row."""
    w1, b1, w2, b2, w3, b3 = params
    return (w1.astype(jnp.bfloat16), b1,      # (70, 512) bf16, (1, 512) f32
            w2.astype(jnp.bfloat16), b2,      # (512, 512) bf16, (1, 512) f32
            w3.T,                             # (1, 512) f32 row for the VPU reduce
            b3)                               # (1, 1) f32


def _round_up(v, m):
    return ((v + m - 1) // m) * m


@functools.partial(jax.jit, static_argnames=("tb",))
def mlp_forward(x, w1b, b1, w2b, b2, w3r, b3, *, tb=512):
    B = x.shape[0]
    # Batch tile: large (amortizes ~0.35 us per grid step), multiple of 8, but
    # capped at ~ceil(B/2) so the "parallel" axis has >=2 steps (megacore on v7x).
    TB = min(tb, _round_up(B, 8))
    TB = max(8, min(TB, _round_up(pl.cdiv(B, 2), 8)))
    grid = (pl.cdiv(B, TB),)   # partial last tile; OOB rows are masked on write

    flops = 2 * B * (IN_DIM * HID + HID * HID + HID)
    bytes_accessed = (
        4 * B * IN_DIM                      # x (f32, read directly — no pad op)
        + 2 * (IN_DIM * HID + HID * HID)    # bf16 weights (resident)
        + 4 * (3 * HID + 1)                 # f32 biases + w3 row + b3
        + 4 * B * OUT_DIM                   # logits out
    )

    return pl.pallas_call(
        mlp_kernel,
        out_shape=jax.ShapeDtypeStruct((B, OUT_DIM), jnp.float32),
        grid=grid,
        in_specs=[
            pl.BlockSpec((TB, IN_DIM), lambda i: (i, 0)),   # x: pipelined per batch tile
            pl.BlockSpec((IN_DIM, HID), lambda i: (0, 0)),  # w1 (bf16): resident
            pl.BlockSpec((1, HID), lambda i: (0, 0)),       # b1 (f32): resident
            pl.BlockSpec((HID, HID), lambda i: (0, 0)),     # w2 (bf16): resident
            pl.BlockSpec((1, HID), lambda i: (0, 0)),       # b2 (f32): resident
            pl.BlockSpec((1, HID), lambda i: (0, 0)),       # w3 row (f32): resident
            pl.BlockSpec((1, OUT_DIM), lambda i: (0, 0)),   # b3 (f32): resident
        ],
        out_specs=pl.BlockSpec((TB, OUT_DIM), lambda i: (i, 0)),
        compiler_params=pltpu.CompilerParams(
            dimension_semantics=("parallel",),   # independent batch tiles (megacore on v7x)
            vmem_limit_bytes=16 << 20,           # working set ~2 MiB; leave headroom on v7x
        ),
        cost_estimate=pl.CostEstimate(
            flops=flops, transcendentals=0, bytes_accessed=bytes_accessed),
    )(x, w1b, b1, w2b, b2, w3r, b3)


if __name__ == "__main__":
    key = jax.random.PRNGKey(0)
    k_x, k_p = jax.random.split(key)

    params = init_params(k_p)
    w1, b1, w2, b2, w3, b3 = params
    prepped = prep_params(params)

    def ref_f32(x):
        h = jnp.maximum(x @ w1 + b1, 0.0)
        h = jnp.maximum(h @ w2 + b2, 0.0)
        return h @ w3 + b3

    def ref_bf16(x):
        # Mirrors the kernel's numerics: bf16 MXU operands, f32 accumulation.
        h = jnp.dot(x.astype(jnp.bfloat16), w1.astype(jnp.bfloat16),
                    preferred_element_type=jnp.float32) + b1
        h = jnp.maximum(h, 0.0).astype(jnp.bfloat16)
        h = jnp.dot(h, w2.astype(jnp.bfloat16),
                    preferred_element_type=jnp.float32) + b2
        h = jnp.maximum(h, 0.0)
        return h @ w3 + b3

    # B=8: single tile; B=200: two tiles with a partial (masked) last tile;
    # B=1024: two full TB=512 tiles (megacore-eligible grid on v7x).
    for B in (8, 200, 1024):
        x = jax.random.normal(jax.random.fold_in(k_x, B), (B, IN_DIM), jnp.float32)
        out = mlp_forward(x, *prepped)
        jax.block_until_ready(out)
        assert out.shape == (B, OUT_DIM), out.shape
        # Tight check against a reference that uses the same bf16/f32 mix.
        assert jnp.allclose(out, ref_bf16(x), atol=2e-3, rtol=2e-3), \
            float(jnp.max(jnp.abs(out - ref_bf16(x))))
        # Loose semantic check against the pure-f32 PyTorch-equivalent forward.
        assert jnp.allclose(out, ref_f32(x), atol=0.15, rtol=0.0), \
            float(jnp.max(jnp.abs(out - ref_f32(x))))

    print("KERNEL_OK")
</pallas_src>

<mosaic_0001>
module attributes {stable_mosaic.version = 11 : i64} {
  func.func @mlp_kernel(%arg0: i32, %arg1: memref<8x70xf32, #tpu.memory_space<vmem>>, %arg2: memref<70x512xbf16, #tpu.memory_space<vmem>>, %arg3: memref<1x512xf32, #tpu.memory_space<vmem>>, %arg4: memref<512x512xbf16, #tpu.memory_space<vmem>>, %arg5: memref<1x512xf32, #tpu.memory_space<vmem>>, %arg6: memref<1x512xf32, #tpu.memory_space<vmem>>, %arg7: memref<1x1xf32, #tpu.memory_space<vmem>>, %arg8: memref<8x1xf32, #tpu.memory_space<vmem>>) attributes {dimension_semantics = [#tpu.dimension_semantics<parallel>], iteration_bounds = array<i64: 1>, scalar_prefetch = 0 : i64, scratch_operands = 0 : i64, tpu.core_type = #tpu.core_type<tc>, window_params = [{transform_indices = @transform_0, window_bounds = array<i64: 8, 70>}, {pipeline_mode = #tpu.pipeline_mode<synchronous>, transform_indices = @transform_1, window_bounds = array<i64: 70, 512>}, {pipeline_mode = #tpu.pipeline_mode<synchronous>, transform_indices = @transform_2, window_bounds = array<i64: 1, 512>}, {pipeline_mode = #tpu.pipeline_mode<synchronous>, transform_indices = @transform_3, window_bounds = array<i64: 512, 512>}, {pipeline_mode = #tpu.pipeline_mode<synchronous>, transform_indices = @transform_4, window_bounds = array<i64: 1, 512>}, {pipeline_mode = #tpu.pipeline_mode<synchronous>, transform_indices = @transform_5, window_bounds = array<i64: 1, 512>}, {pipeline_mode = #tpu.pipeline_mode<synchronous>, transform_indices = @transform_6, window_bounds = array<i64: 1, 1>}, {transform_indices = @transform_7, window_bounds = array<i64: 8, 1>}]} {
    %c0 = arith.constant 0 : index
    %c0_0 = arith.constant 0 : index
    %0 = vector.load %arg1[%c0, %c0_0] : memref<8x70xf32, #tpu.memory_space<vmem>>, vector<8x70xf32>
    %1 = arith.truncf %0 : vector<8x70xf32> to vector<8x70xbf16>
    %c0_1 = arith.constant 0 : index
    %c0_2 = arith.constant 0 : index
    %2 = vector.load %arg2[%c0_1, %c0_2] : memref<70x512xbf16, #tpu.memory_space<vmem>>, vector<70x512xbf16>
    %cst = arith.constant dense<0.000000e+00> : vector<8x512xf32>
    %3 = tpu.matmul %1, %2, %cst {dimension_numbers = #tpu.dot_dimension_numbers<[1], [0], [0], [1], [0, 0, 1, 1], [], []>} : vector<8x70xbf16>, vector<70x512xbf16>, vector<8x512xf32> -> vector<8x512xf32>
    %c0_3 = arith.constant 0 : index
    %c0_4 = arith.constant 0 : index
    %4 = vector.load %arg3[%c0_3, %c0_4] : memref<1x512xf32, #tpu.memory_space<vmem>>, vector<1x512xf32>
    %5 = vector.broadcast %4 : vector<1x512xf32> to vector<8x512xf32>
    %6 = arith.addf %3, %5 : vector<8x512xf32>
    %cst_5 = arith.constant 0.000000e+00 : f32
    %7 = vector.broadcast %cst_5 : f32 to vector<8x512xf32>
    %8 = arith.maximumf %6, %7 : vector<8x512xf32>
    %9 = arith.truncf %8 : vector<8x512xf32> to vector<8x512xbf16>
    %c0_6 = arith.constant 0 : index
    %c0_7 = arith.constant 0 : index
    %10 = vector.load %arg4[%c0_6, %c0_7] : memref<512x512xbf16, #tpu.memory_space<vmem>>, vector<512x512xbf16>
    %cst_8 = arith.constant dense<0.000000e+00> : vector<8x512xf32>
    %11 = tpu.matmul %9, %10, %cst_8 {dimension_numbers = #tpu.dot_dimension_numbers<[1], [0], [0], [1], [0, 0, 1, 1], [], []>} : vector<8x512xbf16>, vector<512x512xbf16>, vector<8x512xf32> -> vector<8x512xf32>
    %c0_9 = arith.constant 0 : index
    %c0_10 = arith.constant 0 : index
    %12 = vector.load %arg5[%c0_9, %c0_10] : memref<1x512xf32, #tpu.memory_space<vmem>>, vector<1x512xf32>
    %13 = vector.broadcast %12 : vector<1x512xf32> to vector<8x512xf32>
    %14 = arith.addf %11, %13 : vector<8x512xf32>
    %cst_11 = arith.constant 0.000000e+00 : f32
    %15 = vector.broadcast %cst_11 : f32 to vector<8x512xf32>
    %16 = arith.maximumf %14, %15 : vector<8x512xf32>
    %c0_12 = arith.constant 0 : index
    %c0_13 = arith.constant 0 : index
    %17 = vector.load %arg6[%c0_12, %c0_13] : memref<1x512xf32, #tpu.memory_space<vmem>>, vector<1x512xf32>
    %18 = vector.broadcast %17 : vector<1x512xf32> to vector<8x512xf32>
    %19 = arith.mulf %16, %18 : vector<8x512xf32>
    %cst_14 = arith.constant dense<0.000000e+00> : vector<8xf32>
    %20 = vector.multi_reduction <add>, %19, %cst_14 [1] : vector<8x512xf32> to vector<8xf32>
    %21 = vector.shape_cast %20 : vector<8xf32> to vector<8x1xf32>
    %c0_15 = arith.constant 0 : index
    %c0_16 = arith.constant 0 : index
    %22 = vector.load %arg7[%c0_15, %c0_16] : memref<1x1xf32, #tpu.memory_space<vmem>>, vector<1x1xf32>
    %23 = vector.broadcast %22 : vector<1x1xf32> to vector<8x1xf32>
    %24 = arith.addf %21, %23 : vector<8x1xf32>
    %c0_17 = arith.constant 0 : index
    %c0_18 = arith.constant 0 : index
    %25 = vector.load %arg8[%c0_17, %c0_18] : memref<8x1xf32, #tpu.memory_space<vmem>>, vector<8x1xf32>
    tpu.vector_store %arg8[%c0_17, %c0_18], %24 {strides = array<i32>} : memref<8x1xf32, #tpu.memory_space<vmem>>, vector<8x1xf32>,
    return
  }
  func.func @transform_0(%arg0: i32) -> (i32, i32) {
    %c0_i32 = arith.constant 0 : i32
    %c0_i32_0 = arith.constant 0 : i32
    return %arg0, %c0_i32 : i32, i32
  }
  func.func @transform_1(%arg0: i32) -> (i32, i32) {
    %c0_i32 = arith.constant 0 : i32
    %c0_i32_0 = arith.constant 0 : i32
    %c0_i32_1 = arith.constant 0 : i32
    return %c0_i32, %c0_i32_0 : i32, i32
  }
  func.func @transform_2(%arg0: i32) -> (i32, i32) {
    %c0_i32 = arith.constant 0 : i32
    %c0_i32_0 = arith.constant 0 : i32
    %c0_i32_1 = arith.constant 0 : i32
    return %c0_i32, %c0_i32_0 : i32, i32
  }
  func.func @transform_3(%arg0: i32) -> (i32, i32) {
    %c0_i32 = arith.constant 0 : i32
    %c0_i32_0 = arith.constant 0 : i32
    %c0_i32_1 = arith.constant 0 : i32
    return %c0_i32, %c0_i32_0 : i32, i32
  }
  func.func @transform_4(%arg0: i32) -> (i32, i32) {
    %c0_i32 = arith.constant 0 : i32
    %c0_i32_0 = arith.constant 0 : i32
    %c0_i32_1 = arith.constant 0 : i32
    return %c0_i32, %c0_i32_0 : i32, i32
  }
  func.func @transform_5(%arg0: i32) -> (i32, i32) {
    %c0_i32 = arith.constant 0 : i32
    %c0_i32_0 = arith.constant 0 : i32
    %c0_i32_1 = arith.constant 0 : i32
    return %c0_i32, %c0_i32_0 : i32, i32
  }
  func.func @transform_6(%arg0: i32) -> (i32, i32) {
    %c0_i32 = arith.constant 0 : i32
    %c0_i32_0 = arith.constant 0 : i32
    %c0_i32_1 = arith.constant 0 : i32
    return %c0_i32, %c0_i32_0 : i32, i32
  }
  func.func @transform_7(%arg0: i32) -> (i32, i32) {
    %c0_i32 = arith.constant 0 : i32
    %c0_i32_0 = arith.constant 0 : i32
    return %arg0, %c0_i32 : i32, i32
  }
}

</mosaic_0001>

<bundles_post_ra>
// kernel: mlp_forward.1
= control target key start
LH: loop header
LB: loop body
LE: loop exit
PB: predicated region body
PF: predicated region fallthrough
CT: control target
= control target key end

     0   :  { %s1912_s0 = inlined_call_operand.hbm [shape: f32[8,70], index: 0, kind: input, shape index: {}]   ;;  %s1913_s1 = inlined_call_operand.hbm [shape: bf16[70,512], index: 1, kind: input, shape index: {}]   ;;  %s1914_s2 = inlined_call_operand.vmem [shape: f32[1,512], index: 2, kind: input, shape index: {}]   ;;  %s1915_s3 = inlined_call_operand.hbm [shape: bf16[512,512], index: 3, kind: input, shape index: {}]   ;;  %s1916_s4 = inlined_call_operand.vmem [shape: f32[1,512], index: 4, kind: input, shape index: {}]   ;;  %s1917_s5 = inlined_call_operand.vmem [shape: f32[1,512], index: 5, kind: input, shape index: {}]   ;;  %s1918_s6 = inlined_call_operand.<no memory space> [shape: f32[1,1], index: 6, kind: input, shape index: {}]   ;;  %s1919_s7 = inlined_call_operand.vmem [shape: f32[8,1], index: 7, kind: output, shape index: {}]  }
   0x1   :  { %v12_v0 = vstv %s1918_s6 }
   0x2   :  { %13 = vst [vmem:[#allocation2] sm:$0x1] %v12_v0 }
   0x3   :  { %14 = vsyncpa [#allocation4], 0 }
   0x4   :  { %15 = vsyncpa [#allocation6], 0  ;;  %s1773_s26 = smov [#allocation5]   ;;  %s1703_s30 = scalar_lea.hbm %s1913_s1, 2304 }
   0x5   :  { %s31_s27 = sshll.u32 %s1773_s26, 4  ;;  %p1704_p0 = scmp.ne.s32.totalorder %s1913_s1, %s1703_s30  ;;  %s32_s27 = int_to_ptr.vmem [resolvable:$true] %s31_s27 }
   0x6   :  { %p1707_p1 = scmp.lt.u32.totalorder %s1703_s30, %s1913_s1 }
   0x8   :  { %p1709_p2 = pnand %p1707_p1, %p1704_p0 }
   0xa   :  { %1712 = shalt.err (!%p1709_p2)
}
   0xb   :  { %s1713_s6 = scalar_lea.vmem %s32_s27, 2304  ;;  %p1718_p4 = scmp.lt.s32.totalorder %s32_s27, %s32_s27 }
   0xc   :  { %p1714_p3 = scmp.ne.s32.totalorder %s32_s27, %s1713_s6  ;;  %p1719_p5 = scmp.lt.s32.totalorder %s1713_s6, %s1713_s6 }
   0xe   :  { %p1720_p6 = por %p1719_p5, %p1718_p4 }
  0x10   :  { %p1721_p7 = pnand %p1720_p6, %p1714_p3 }
  0x12   :  { %1724 = shalt.err (!%p1721_p7)
}
  0x13   :  { %s1774_s12 = smov 256   ;;  %s1775_s13 = smov 16  }
  0x14   :  { %37 = dma.hbm_to_vmem [thread:$0]  %s1913_s1, 2304, %s32_s27, [#allocation6], %s1774_s12, %s1774_s12, %s1775_s13  }
  0x15   :  { %s1776_s16 = smov [#allocation3]   ;;  %s1777_s18 = smov [#allocation7]  }
  0x16   :  { %s22_s17 = sshll.u32 %s1776_s16, 4  ;;  %s45_s19 = sshll.u32 %s1777_s18, 4  ;;  %s23_s17 = int_to_ptr.vmem [resolvable:$true] %s22_s17  ;;  %s46_s19 = int_to_ptr.vmem [resolvable:$true] %s45_s19 }
  0x17   :  { %s1725_s22 = scalar_lea.hbm %s1912_s0, 128 }
  0x18   :  { %p1726_p8 = scmp.ne.s32.totalorder %s1912_s0, %s1725_s22  ;;  %p1729_p9 = scmp.lt.u32.totalorder %s1725_s22, %s1912_s0 }
  0x1a   :  { %p1731_p10 = pnand %p1729_p9, %p1726_p8 }
  0x1c   :  { %1734 = shalt.err (!%p1731_p10)
}
  0x1d   :  { %s1735_s1 = scalar_lea.vmem %s23_s17, 128  ;;  %p1740_p12 = scmp.lt.s32.totalorder %s23_s17, %s23_s17 }
  0x1e   :  { %p1736_p11 = scmp.ne.s32.totalorder %s23_s17, %s1735_s1  ;;  %p1741_p13 = scmp.lt.s32.totalorder %s1735_s1, %s1735_s1 }
  0x20   :  { %p1742_p0 = por %p1741_p13, %p1740_p12 }
  0x22   :  { %p1743_p1 = pnand %p1742_p0, %p1736_p11 }
  0x24   :  { %1746 = shalt.err (!%p1743_p1)
}
  0x25   :  { %25 = dma.hbm_to_vmem [thread:$0]  %s1912_s0, 128, %s23_s17, [#allocation4]  }
  0x26   :  { %s1747_s8 = scalar_lea.hbm %s1915_s3, 16384 }
  0x27   :  { %p1748_p2 = scmp.ne.s32.totalorder %s1915_s3, %s1747_s8  ;;  %p1751_p3 = scmp.lt.u32.totalorder %s1747_s8, %s1915_s3 }
  0x29   :  { %p1753_p4 = pnand %p1751_p3, %p1748_p2 }
  0x2b   :  { %1756 = shalt.err (!%p1753_p4)
}
  0x2c   :  { %s1757_s14 = scalar_lea.vmem %s46_s19, 16384  ;;  %p1762_p6 = scmp.lt.s32.totalorder %s46_s19, %s46_s19 }
  0x2d   :  { %p1758_p5 = scmp.ne.s32.totalorder %s46_s19, %s1757_s14  ;;  %p1763_p7 = scmp.lt.s32.totalorder %s1757_s14, %s1757_s14 }
  0x2f   :  { %p1764_p8 = por %p1763_p7, %p1762_p6 }
  0x31   :  { %p1765_p9 = pnand %p1764_p8, %p1758_p5 }
  0x33   :  { %1768 = shalt.err (!%p1765_p9)
}
  0x34   :  { %51 = dma.hbm_to_vmem [thread:$0]  %s1915_s3, 16384, %s46_s19, [#allocation6], %s1774_s12, %s1774_s12, %s1775_s13  }
  0x35   :  { %1769 = dma.done.wait [#allocation4], 128  }
  0x36   :  { %1770 = vsyncadd [#allocation4], 4294967168 }
  0x37   :  { %1771 = dma.done.wait [#allocation6], 18688  }
  0x38   :  { %1772 = vsyncadd [#allocation6], 4294948608  ;;  %v1778_v1 = vmov 0   ;;  %v1483_v2 = vld [vmem:[#allocation5 + $0x4] ss:$16 sps:$4 sm:$0xff]   ;;  %vm204_vm0 = vcmask 1042432  }
  0x39   :  { %249 = vmatprep.mubr.bf16.mxu0 %v1778_v1  ;;  %290 = vmatprep.mubr.bf16.mxu1 %v1778_v1  ;;  %v1485_v3 = vld [vmem:[#allocation5] ss:$16 sps:$4 sm:$0xff]   ;;  %v1486_v4 = vld [vmem:[#allocation5 + $0x24] ss:$16 sps:$4 sm:$0xff]   ;;  %v1497_v8 = vld [vmem:[#allocation5 + $0xc] ss:$16 sps:$4 sm:$0xff]  }
  0x3a   :  { %217 = vmatprep.subr.bf16.mxu0 %v1483_v2  ;;  %v1488_v5 = vld [vmem:[#allocation5 + $0x20] ss:$16 sps:$4 sm:$0xff]   ;;  %v1489_v6 = vld [vmem:[#allocation5 + $0x44] ss:$16 sps:$4 sm:$0xff]   ;;  %v1499_v9 = vld [vmem:[#allocation5 + $0x8] ss:$16 sps:$4 sm:$0xff]   ;;  %258 = vmatprep.subr.bf16.mxu1 %v1497_v8 }
  0x3b   :  { %218 = vmatpush1.bf16.msra.mxu0 %v1485_v3  ;;  %v1491_v7 = vld [vmem:[#allocation5 + $0x40] ss:$16 sps:$4 sm:$0xff]   ;;  %v1492_v10 = vld [vmem:[#allocation5 + $0x64] ss:$16 sps:$4 sm:$0xff]   ;;  %v1500_v11 = vld [vmem:[#allocation5 + $0x2c] ss:$16 sps:$4 sm:$0xff]   ;;  %259 = vmatpush1.bf16.msra.mxu1 %v1499_v9 }
  0x3c   :  { %219 = vmatprep.subr.bf16.mxu0 %v1486_v4  ;;  %v86_v12 = vld [vmem:[#allocation5 + $0x80] sm:$0x77]  ;;  %v1502_v13 = vld [vmem:[#allocation5 + $0x28] ss:$16 sps:$4 sm:$0xff]   ;;  %260 = vmatprep.subr.bf16.mxu1 %v1500_v11  ;;  %v1503_v14 = vld [vmem:[#allocation5 + $0x4c] ss:$16 sps:$4 sm:$0xff]  }
  0x3d   :  { %v1494_v15 = vld [vmem:[#allocation5 + $0x60] ss:$16 sps:$4 sm:$0xff]   ;;  %v1329_v16 = vcombine.high %v86_v12, %v86_v12  ;;  %v1328_v17 = vcombine.low %v86_v12, %v86_v12  ;;  %v1505_v18 = vld [vmem:[#allocation5 + $0x48] ss:$16 sps:$4 sm:$0xff]   ;;  %v1506_v19 = vld [vmem:[#allocation5 + $0x6c] ss:$16 sps:$4 sm:$0xff]  }
  0x3e   :  { %v68_v20 = vld [vmem:[#allocation3] sm:$0xff]  ;;  %v87_v21 = vld [vmem:[#allocation5 + $0x88] sm:$0x77]  ;;  %v1513_v23 = vld [vmem:[#allocation7 + $0x4] ss:$16 sps:$4 sm:$0xff]   ;;  %vm200_vm1 = vcmask 572416  }
  0x3f   :  { %220 = vmatpush1.bf16.msra.mxu0 %v1488_v5  ;;  %261 = vmatpush1.bf16.msra.mxu1 %v1502_v13  ;;  %v206_v22 = vsel %vm204_vm0, %v1328_v17, 0  ;;  %v1508_v24 = vld [vmem:[#allocation5 + $0x68] ss:$16 sps:$4 sm:$0xff]   ;;  %v69_v25 = vpack.c.bf16 %v68_v20, %v68_v20  ;;  %v1331_v26 = vcombine.high %v87_v21, %v87_v21  ;;  %v1330_v27 = vcombine.low %v87_v21, %v87_v21  ;;  %v1511_v28 = vld [vmem:[#allocation7] ss:$16 sps:$4 sm:$0xff]  }
  0x40   :  { %221 = vmatprep.subr.bf16.mxu0 %v1489_v6  ;;  %262 = vmatprep.subr.bf16.mxu1 %v1503_v14  ;;  %v1519_v29 = vld [vmem:[#allocation7 + $0x24] ss:$16 sps:$4 sm:$0xff]   ;;  %v1516_v31 = vld [vmem:[#allocation7 + $0xc] ss:$16 sps:$4 sm:$0xff]   ;;  %v1517_v32 = vld [vmem:[#allocation7 + $0x20] ss:$16 sps:$4 sm:$0xff]  }
  0x41   :  { %v212_v30 = vsel %vm204_vm0, %v1330_v27, 0  ;;  %v1525_v33 = vld [vmem:[#allocation7 + $0x44] ss:$16 sps:$4 sm:$0xff]   ;;  %v1514_v34 = vld [vmem:[#allocation7 + $0x8] ss:$16 sps:$4 sm:$0xff]   ;;  %vm1304_vm2 = vcmask 7168  }
  0x42   :  { %v1522_v35 = vld [vmem:[#allocation7 + $0x2c] ss:$16 sps:$4 sm:$0xff]   ;;  %v1523_v36 = vld [vmem:[#allocation7 + $0x40] ss:$16 sps:$4 sm:$0xff]   ;;  %v1531_v37 = vld [vmem:[#allocation7 + $0x64] ss:$16 sps:$4 sm:$0xff]  }
  0x43   :  { %222 = vmatpush1.bf16.msra.mxu0 %v1491_v7  ;;  %263 = vmatpush1.bf16.msra.mxu1 %v1505_v18  ;;  %v1520_v38 = vld [vmem:[#allocation7 + $0x28] ss:$16 sps:$4 sm:$0xff]   ;;  %v1528_v39 = vld [vmem:[#allocation7 + $0x4c] ss:$16 sps:$4 sm:$0xff]   ;;  %v1529_v40 = vld [vmem:[#allocation7 + $0x60] ss:$16 sps:$4 sm:$0xff]  }
  0x44   :  { %223 = vmatprep.subr.bf16.mxu0 %v1492_v10  ;;  %264 = vmatprep.subr.bf16.mxu1 %v1506_v19  ;;  %v1537_v41 = vld [vmem:[#allocation7 + $0x84] ss:$16 sps:$4 sm:$0xff]   ;;  %v1526_v42 = vld [vmem:[#allocation7 + $0x48] ss:$16 sps:$4 sm:$0xff]   ;;  %v1534_v43 = vld [vmem:[#allocation7 + $0x6c] ss:$16 sps:$4 sm:$0xff]  }
  0x45   :  { %v1535_v44 = vld [vmem:[#allocation7 + $0x80] ss:$16 sps:$4 sm:$0xff]   ;;  %v1543_v45 = vld [vmem:[#allocation7 + $0xa4] ss:$16 sps:$4 sm:$0xff]   ;;  %v1532_v46 = vld [vmem:[#allocation7 + $0x68] ss:$16 sps:$4 sm:$0xff]  }
  0x46   :  { %v1540_v47 = vld [vmem:[#allocation7 + $0x8c] ss:$16 sps:$4 sm:$0xff]   ;;  %v1541_v48 = vld [vmem:[#allocation7 + $0xa0] ss:$16 sps:$4 sm:$0xff]   ;;  %v1549_v49 = vld [vmem:[#allocation7 + $0xc4] ss:$16 sps:$4 sm:$0xff]  }
  0x47   :  { %224 = vmatpush1.bf16.msra.mxu0 %v1494_v15  ;;  %265 = vmatpush1.bf16.msra.mxu1 %v1508_v24  ;;  %v1538_v50 = vld [vmem:[#allocation7 + $0x88] ss:$16 sps:$4 sm:$0xff]   ;;  %v1546_v51 = vld [vmem:[#allocation7 + $0xac] ss:$16 sps:$4 sm:$0xff]   ;;  %v1547_v52 = vld [vmem:[#allocation7 + $0xc0] ss:$16 sps:$4 sm:$0xff]  }
  0x48   :  { %1332 = vmatprep.subr.msk.bf16.mxu0 %vm204_vm0, %v1329_v16  ;;  %1334 = vmatprep.subr.msk.bf16.mxu1 %vm204_vm0, %v1331_v26  ;;  %v1555_v53 = vld [vmem:[#allocation7 + $0xe4] ss:$16 sps:$4 sm:$0xff]   ;;  %v1544_v54 = vld [vmem:[#allocation7 + $0xa8] ss:$16 sps:$4 sm:$0xff]   ;;  %v1552_v55 = vld [vmem:[#allocation7 + $0xcc] ss:$16 sps:$4 sm:$0xff]  }
  0x49   :  { %v1550_v56 = vld [vmem:[#allocation7 + $0xc8] ss:$16 sps:$4 sm:$0xff]   ;;  %v1553_v57 = vld [vmem:[#allocation7 + $0xe0] ss:$16 sps:$4 sm:$0xff]   ;;  %v1558_v58 = vld [vmem:[#allocation7 + $0xec] ss:$16 sps:$4 sm:$0xff]  }
  0x4a   :  { %v1561_v59 = vld [vmem:[#allocation7 + $0x104] ss:$16 sps:$4 sm:$0xff]   ;;  %v1559_v60 = vld [vmem:[#allocation7 + $0x100] ss:$16 sps:$4 sm:$0xff]   ;;  %v1556_v62 = vld [vmem:[#allocation7 + $0xe8] ss:$16 sps:$4 sm:$0xff]  }
  0x4b   :  { %226 = vmatpush1.bf16.msra.mxu0 %v206_v22  ;;  %267 = vmatpush1.bf16.msra.mxu1 %v212_v30  ;;  %v1567_v61 = vld [vmem:[#allocation7 + $0x124] ss:$16 sps:$4 sm:$0xff]   ;;  %v1564_v63 = vld [vmem:[#allocation7 + $0x10c] ss:$16 sps:$4 sm:$0xff]   ;;  %v1565_v0 = vld [vmem:[#allocation7 + $0x120] ss:$16 sps:$4 sm:$0xff]   ;;  %v90_v30 = vlaneseq }
  0x4c   :  { %1097 = vmatprep.subr.bf16.mxu0 %v1513_v23  ;;  %1179 = vmatprep.subr.bf16.mxu1 %v1516_v31  ;;  %v1573_v1 = vld [vmem:[#allocation7 + $0x144] ss:$16 sps:$4 sm:$0xff]   ;;  %v1562_v2 = vld [vmem:[#allocation7 + $0x108] ss:$16 sps:$4 sm:$0xff]   ;;  %v1570_v3 = vld [vmem:[#allocation7 + $0x12c] ss:$16 sps:$4 sm:$0xff]  }
  0x4d   :  { %v1571_v4 = vld [vmem:[#allocation7 + $0x140] ss:$16 sps:$4 sm:$0xff]   ;;  %v1579_v5 = vld [vmem:[#allocation7 + $0x164] ss:$16 sps:$4 sm:$0xff]   ;;  %v1568_v6 = vld [vmem:[#allocation7 + $0x128] ss:$16 sps:$4 sm:$0xff]  }
  0x4e   :  { %1333 = vmatmul.mubr.msk.bf16.vlgmr.msra.gmra.mrb[0].mxu0 %vm200_vm1, %v69_v25  ;;  %1335 = vmatmul.mubr.msk.bf16.vlgmr.msra.gmra.mrb[0].mxu1 %vm200_vm1, %v69_v25  ;;  %v1576_v7 = vld [vmem:[#allocation7 + $0x14c] ss:$16 sps:$4 sm:$0xff]   ;;  %v1577_v8 = vld [vmem:[#allocation7 + $0x160] ss:$16 sps:$4 sm:$0xff]   ;;  %v1585_v9 = vld [vmem:[#allocation7 + $0x184] ss:$16 sps:$4 sm:$0xff]  }
  0x4f   :  { %1098 = vmatpush1.bf16.msra.mxu0 %v1511_v28  ;;  %1180 = vmatpush1.bf16.msra.mxu1 %v1514_v34  ;;  %v1574_v10 = vld [vmem:[#allocation7 + $0x148] ss:$16 sps:$4 sm:$0xff]   ;;  %v1582_v11 = vld [vmem:[#allocation7 + $0x16c] ss:$16 sps:$4 sm:$0xff]   ;;  %v1583_v12 = vld [vmem:[#allocation7 + $0x180] ss:$16 sps:$4 sm:$0xff]  }
  0x50   :  { %1099 = vmatprep.subr.bf16.mxu0 %v1519_v29  ;;  %1181 = vmatprep.subr.bf16.mxu1 %v1522_v35  ;;  %v1591_v13 = vld [vmem:[#allocation7 + $0x1a4] ss:$16 sps:$4 sm:$0xff]   ;;  %v1580_v14 = vld [vmem:[#allocation7 + $0x168] ss:$16 sps:$4 sm:$0xff]   ;;  %v1588_v15 = vld [vmem:[#allocation7 + $0x18c] ss:$16 sps:$4 sm:$0xff]  }
  0x51   :  { %v1589_v16 = vld [vmem:[#allocation7 + $0x1a0] ss:$16 sps:$4 sm:$0xff]   ;;  %v1586_v17 = vld [vmem:[#allocation7 + $0x188] ss:$16 sps:$4 sm:$0xff]   ;;  %v1594_v18 = vld [vmem:[#allocation7 + $0x1ac] ss:$16 sps:$4 sm:$0xff]  }
  0x52   :  { %v1592_v19 = vld [vmem:[#allocation7 + $0x1a8] ss:$16 sps:$4 sm:$0xff]   ;;  %v1597_v20 = vld [vmem:[#allocation7 + $0x1c4] ss:$16 sps:$4 sm:$0xff]   ;;  %v1600_v21 = vld [vmem:[#allocation7 + $0x1cc] ss:$16 sps:$4 sm:$0xff]  }
  0x53   :  { %1100 = vmatpush1.bf16.msra.mxu0 %v1517_v32  ;;  %1182 = vmatpush1.bf16.msra.mxu1 %v1520_v38  ;;  %v1595_v22 = vld [vmem:[#allocation7 + $0x1c0] ss:$16 sps:$4 sm:$0xff]   ;;  %v1598_v23 = vld [vmem:[#allocation7 + $0x1c8] ss:$16 sps:$4 sm:$0xff]   ;;  %v1603_v24 = vld [vmem:[#allocation7 + $0x1e4] ss:$16 sps:$4 sm:$0xff]  }
  0x54   :  { %1101 = vmatprep.subr.bf16.mxu0 %v1525_v33  ;;  %1183 = vmatprep.subr.bf16.mxu1 %v1528_v39  ;;  %v1606_v25 = vld [vmem:[#allocation7 + $0x1ec] ss:$16 sps:$4 sm:$0xff]   ;;  %v1601_v26 = vld [vmem:[#allocation7 + $0x1e0] ss:$16 sps:$4 sm:$0xff]   ;;  %v1604_v27 = vld [vmem:[#allocation7 + $0x1e8] ss:$16 sps:$4 sm:$0xff]  }
  0x55   :  { %v1609_v28 = vld [vmem:[#allocation7 + $0x204] ss:$16 sps:$4 sm:$0xff]   ;;  %v1612_v29 = vld [vmem:[#allocation7 + $0x20c] ss:$16 sps:$4 sm:$0xff]   ;;  %v1870_v31 = vshrl.u32 %v90_v30, 7 }
  0x56   :  { %v1878_v33 = vld [vmem:[%s1914_s2] sm:$0xf] }
  0x57   :  { %1102 = vmatpush1.bf16.msra.mxu0 %v1523_v36  ;;  %1184 = vmatpush1.bf16.msra.mxu1 %v1526_v42  ;;  %v1873_v32 = vsub.s32 0, %v1870_v31  ;;  %v1881_v34 = vsub.s32 1, %v1870_v31  ;;  %v1888_v38 = vsub.s32 3, %v1870_v31  ;;  %v1669_v30 = vld [vmem:[#allocation7 + $0x344] ss:$16 sps:$4 sm:$0xff]  }
  0x58   :  { %1103 = vmatprep.subr.bf16.mxu0 %v1531_v37  ;;  %1185 = vmatprep.subr.bf16.mxu1 %v1534_v43 }
  0x59   :  { %v93_v35 = vrot.slane %v1878_v33, %v1873_v32  ;;  %v97_v36 = vrot.slane %v1878_v33, %v1881_v34 }
  0x5b   :  { %1104 = vmatpush1.bf16.msra.mxu0 %v1529_v40  ;;  %1186 = vmatpush1.bf16.msra.mxu1 %v1532_v46  ;;  %v105_v46 = vrot.slane %v1878_v33, %v1888_v38 }
  0x5c   :  { %1105 = vmatprep.subr.bf16.mxu0 %v1537_v41  ;;  %1187 = vmatprep.subr.bf16.mxu1 %v1540_v47 }
  0x5f   :  { %1106 = vmatpush1.bf16.msra.mxu0 %v1535_v44  ;;  %1188 = vmatpush1.bf16.msra.mxu1 %v1538_v50 }
  0x60   :  { %1107 = vmatprep.subr.bf16.mxu0 %v1543_v45  ;;  %1189 = vmatprep.subr.bf16.mxu1 %v1546_v51 }
  0x63   :  { %1108 = vmatpush1.bf16.msra.mxu0 %v1541_v48  ;;  %1190 = vmatpush1.bf16.msra.mxu1 %v1544_v54  ;;  %v1607_v48 = vld [vmem:[#allocation7 + $0x200] ss:$16 sps:$4 sm:$0xff]  }
  0x64   :  { %1109 = vmatprep.subr.bf16.mxu0 %v1549_v49  ;;  %1191 = vmatprep.subr.bf16.mxu1 %v1552_v55  ;;  %v1610_v49 = vld [vmem:[#allocation7 + $0x208] ss:$16 sps:$4 sm:$0xff]  }
  0x67   :  { %1110 = vmatpush1.bf16.msra.mxu0 %v1547_v52  ;;  %1192 = vmatpush1.bf16.msra.mxu1 %v1550_v56  ;;  %v1615_v52 = vld [vmem:[#allocation7 + $0x224] ss:$16 sps:$4 sm:$0xff]  }
  0x68   :  { %1111 = vmatprep.subr.bf16.mxu0 %v1555_v53  ;;  %1193 = vmatprep.subr.bf16.mxu1 %v1558_v58  ;;  %v1618_v53 = vld [vmem:[#allocation7 + $0x22c] ss:$16 sps:$4 sm:$0xff]   ;;  %v1613_v58 = vld [vmem:[#allocation7 + $0x220] ss:$16 sps:$4 sm:$0xff]  }
  0x6b   :  { %1112 = vmatpush1.bf16.msra.mxu0 %v1553_v57  ;;  %1194 = vmatpush1.bf16.msra.mxu1 %v1556_v62  ;;  %v1624_v62 = vld [vmem:[#allocation7 + $0x24c] ss:$16 sps:$4 sm:$0xff]  }
  0x6c   :  { %1113 = vmatprep.subr.bf16.mxu0 %v1561_v59  ;;  %1195 = vmatprep.subr.bf16.mxu1 %v1564_v63  ;;  %v1616_v59 = vld [vmem:[#allocation7 + $0x228] ss:$16 sps:$4 sm:$0xff]  }
  0x6f   :  { %1114 = vmatpush1.bf16.msra.mxu0 %v1559_v60  ;;  %1196 = vmatpush1.bf16.msra.mxu1 %v1562_v2  ;;  %v1627_v2 = vld [vmem:[#allocation7 + $0x264] ss:$16 sps:$4 sm:$0xff]  }
  0x70   :  { %1115 = vmatprep.subr.bf16.mxu0 %v1567_v61  ;;  %1197 = vmatprep.subr.bf16.mxu1 %v1570_v3  ;;  %v1621_v61 = vld [vmem:[#allocation7 + $0x244] ss:$16 sps:$4 sm:$0xff]   ;;  %v1630_v3 = vld [vmem:[#allocation7 + $0x26c] ss:$16 sps:$4 sm:$0xff]  }
  0x73   :  { %1116 = vmatpush1.bf16.msra.mxu0 %v1565_v0  ;;  %1198 = vmatpush1.bf16.msra.mxu1 %v1568_v6  ;;  %v1619_v0 = vld [vmem:[#allocation7 + $0x240] ss:$16 sps:$4 sm:$0xff]   ;;  %v1633_v6 = vld [vmem:[#allocation7 + $0x284] ss:$16 sps:$4 sm:$0xff]  }
  0x74   :  { %1117 = vmatprep.subr.bf16.mxu0 %v1573_v1  ;;  %1199 = vmatprep.subr.bf16.mxu1 %v1576_v7  ;;  %v1622_v1 = vld [vmem:[#allocation7 + $0x248] ss:$16 sps:$4 sm:$0xff]   ;;  %v1636_v7 = vld [vmem:[#allocation7 + $0x28c] ss:$16 sps:$4 sm:$0xff]  }
  0x77   :  { %1118 = vmatpush1.bf16.msra.mxu0 %v1571_v4  ;;  %1200 = vmatpush1.bf16.msra.mxu1 %v1574_v10  ;;  %v1625_v4 = vld [vmem:[#allocation7 + $0x260] ss:$16 sps:$4 sm:$0xff]   ;;  %v1639_v10 = vld [vmem:[#allocation7 + $0x2a4] ss:$16 sps:$4 sm:$0xff]  }
  0x78   :  { %1119 = vmatprep.subr.bf16.mxu0 %v1579_v5  ;;  %1201 = vmatprep.subr.bf16.mxu1 %v1582_v11  ;;  %v1628_v5 = vld [vmem:[#allocation7 + $0x268] ss:$16 sps:$4 sm:$0xff]   ;;  %v1642_v11 = vld [vmem:[#allocation7 + $0x2ac] ss:$16 sps:$4 sm:$0xff]  }
  0x7b   :  { %1120 = vmatpush1.bf16.msra.mxu0 %v1577_v8  ;;  %1202 = vmatpush1.bf16.msra.mxu1 %v1580_v14  ;;  %v1631_v8 = vld [vmem:[#allocation7 + $0x280] ss:$16 sps:$4 sm:$0xff]   ;;  %v1645_v14 = vld [vmem:[#allocation7 + $0x2c4] ss:$16 sps:$4 sm:$0xff]  }
  0x7c   :  { %1121 = vmatprep.subr.bf16.mxu0 %v1585_v9  ;;  %1203 = vmatprep.subr.bf16.mxu1 %v1588_v15  ;;  %v1634_v9 = vld [vmem:[#allocation7 + $0x288] ss:$16 sps:$4 sm:$0xff]   ;;  %v1648_v15 = vld [vmem:[#allocation7 + $0x2cc] ss:$16 sps:$4 sm:$0xff]  }
  0x7f   :  { %1122 = vmatpush1.bf16.msra.mxu0 %v1583_v12  ;;  %1204 = vmatpush1.bf16.msra.mxu1 %v1586_v17  ;;  %v1637_v12 = vld [vmem:[#allocation7 + $0x2a0] ss:$16 sps:$4 sm:$0xff]   ;;  %v1646_v17 = vld [vmem:[#allocation7 + $0x2c8] ss:$16 sps:$4 sm:$0xff]  }
  0x80   :  { %1123 = vmatprep.subr.bf16.mxu0 %v1591_v13  ;;  %1205 = vmatprep.subr.bf16.mxu1 %v1594_v18  ;;  %v1640_v13 = vld [vmem:[#allocation7 + $0x2a8] ss:$16 sps:$4 sm:$0xff]   ;;  %v1651_v18 = vld [vmem:[#allocation7 + $0x2e4] ss:$16 sps:$4 sm:$0xff]  }
  0x83   :  { %1124 = vmatpush1.bf16.msra.mxu0 %v1589_v16  ;;  %1206 = vmatpush1.bf16.msra.mxu1 %v1592_v19  ;;  %v1643_v16 = vld [vmem:[#allocation7 + $0x2c0] ss:$16 sps:$4 sm:$0xff]   ;;  %v1654_v19 = vld [vmem:[#allocation7 + $0x2ec] ss:$16 sps:$4 sm:$0xff]  }
  0x84   :  { %1125 = vmatprep.subr.bf16.mxu0 %v1597_v20  ;;  %1207 = vmatprep.subr.bf16.mxu1 %v1600_v21  ;;  %v1649_v20 = vld [vmem:[#allocation7 + $0x2e0] ss:$16 sps:$4 sm:$0xff]   ;;  %v1652_v21 = vld [vmem:[#allocation7 + $0x2e8] ss:$16 sps:$4 sm:$0xff]  }
  0x87   :  { %1126 = vmatpush1.bf16.msra.mxu0 %v1595_v22  ;;  %1208 = vmatpush1.bf16.msra.mxu1 %v1598_v23  ;;  %v1657_v22 = vld [vmem:[#allocation7 + $0x304] ss:$16 sps:$4 sm:$0xff]   ;;  %v1660_v23 = vld [vmem:[#allocation7 + $0x30c] ss:$16 sps:$4 sm:$0xff]  }
  0x88   :  { %1127 = vmatprep.subr.bf16.mxu0 %v1603_v24  ;;  %1209 = vmatprep.subr.bf16.mxu1 %v1606_v25  ;;  %v1655_v24 = vld [vmem:[#allocation7 + $0x300] ss:$16 sps:$4 sm:$0xff]   ;;  %v1658_v25 = vld [vmem:[#allocation7 + $0x308] ss:$16 sps:$4 sm:$0xff]  }
  0x8b   :  { %1128 = vmatpush1.bf16.msra.mxu0 %v1601_v26  ;;  %1210 = vmatpush1.bf16.msra.mxu1 %v1604_v27  ;;  %v1663_v26 = vld [vmem:[#allocation7 + $0x324] ss:$16 sps:$4 sm:$0xff]   ;;  %v1666_v27 = vld [vmem:[#allocation7 + $0x32c] ss:$16 sps:$4 sm:$0xff]  }
  0x8c   :  { %1138 = vmatprep.subr.bf16.mxu0 %v1609_v28  ;;  %1220 = vmatprep.subr.bf16.mxu1 %v1612_v29  ;;  %v1661_v28 = vld [vmem:[#allocation7 + $0x320] ss:$16 sps:$4 sm:$0xff]   ;;  %v1664_v29 = vld [vmem:[#allocation7 + $0x328] ss:$16 sps:$4 sm:$0xff]  }
 0x121   :  { %v251_v37 = vpop.f32.mrb[0].mxu0  ;;  %v1892_v50 = vpop.f32.mrb[0].mxu1 }
 0x122   :  { %v252_v39 = vadd.f32 %v251_v37, %v93_v35  ;;  %v253_v40 = vpop.f32.mrb[1].mxu0  ;;  %v294_v54 = vpop.f32.mrb[1].mxu1  ;;  %v1672_v35 = vld [vmem:[#allocation7 + $0x34c] ss:$16 sps:$4 sm:$0xff]   ;;  %v1670_v37 = vld [vmem:[#allocation7 + $0x348] ss:$16 sps:$4 sm:$0xff]  }
 0x123   :  { %v254_v41 = vadd.f32 %v253_v40, %v97_v36  ;;  %v255_v42 = vpop.f32.mrb[2].mxu0  ;;  %v295_v55 = vadd.f32 %v294_v54, %v105_v46  ;;  %v296_v56 = vpop.f32.mrb[2].mxu1  ;;  %v1667_v36 = vld [vmem:[#allocation7 + $0x340] ss:$16 sps:$4 sm:$0xff]   ;;  %v1678_v40 = vld [vmem:[#allocation7 + $0x36c] ss:$16 sps:$4 sm:$0xff]  }
 0x124   :  { %v299_v43 = vmax.f32 %v252_v39, 0.0  ;;  %v256_v44 = vpop.f32.mrb[3].mxu0  ;;  %v297_v57 = vpop.f32.mrb[3].mxu1  ;;  %v1675_v39 = vld [vmem:[#allocation7 + $0x364] ss:$16 sps:$4 sm:$0xff]  }
 0x125   :  { %v300_v45 = vmax.f32 %v254_v41, 0.0  ;;  %v302_v60 = vmax.f32 %v295_v55, 0.0  ;;  %v1673_v41 = vld [vmem:[#allocation7 + $0x360] ss:$16 sps:$4 sm:$0xff]   ;;  %v1676_v42 = vld [vmem:[#allocation7 + $0x368] ss:$16 sps:$4 sm:$0xff]  }
 0x126   :  { %v303_v51 = vpack.c.bf16 %v299_v43, %v299_v43  ;;  %v1681_v43 = vld [vmem:[#allocation7 + $0x384] ss:$16 sps:$4 sm:$0xff]   ;;  %v1684_v44 = vld [vmem:[#allocation7 + $0x38c] ss:$16 sps:$4 sm:$0xff]   ;;  %v1682_v46 = vld [vmem:[#allocation7 + $0x388] ss:$16 sps:$4 sm:$0xff]  }
 0x127   :  { %v304_v47 = vpack.c.bf16 %v300_v45, %v300_v45  ;;  %v306_v63 = vpack.c.bf16 %v302_v60, %v302_v60  ;;  %v1679_v45 = vld [vmem:[#allocation7 + $0x380] ss:$16 sps:$4 sm:$0xff]   ;;  %v1693_v54 = vld [vmem:[#allocation7 + $0x3c4] ss:$16 sps:$4 sm:$0xff]   ;;  %v1696_v55 = vld [vmem:[#allocation7 + $0x3cc] ss:$16 sps:$4 sm:$0xff]  }
 0x128   :  { %v1691_v56 = vld [vmem:[#allocation7 + $0x3c0] ss:$16 sps:$4 sm:$0xff]   ;;  %v1694_v57 = vld [vmem:[#allocation7 + $0x3c8] ss:$16 sps:$4 sm:$0xff]  }
 0x129   :  { %1129 = vmatprep.mubr.bf16.mxu0 %v304_v47  ;;  %1211 = vmatprep.mubr.bf16.mxu1 %v304_v47  ;;  %v100_v47 = vsub.s32 2, %v1870_v31  ;;  %v1699_v31 = vld [vmem:[#allocation7 + $0x3e4] ss:$16 sps:$4 sm:$0xff]   ;;  %v1697_v60 = vld [vmem:[#allocation7 + $0x3e0] ss:$16 sps:$4 sm:$0xff]  }
 0x12a   :  { %1130 = vmatmul.mubr.bf16.vlgmr.msra.gmra.mrb[4].mxu0 %v303_v51  ;;  %1212 = vmatmul.mubr.bf16.vlgmr.msra.gmra.mrb[4].mxu1 %v303_v51  ;;  %v1685_v51 = vld [vmem:[#allocation7 + $0x3a0] ss:$16 sps:$4 sm:$0xff]  }
 0x12b   :  { %1139 = vmatpush1.bf16.msra.mxu0 %v1607_v48  ;;  %1221 = vmatpush1.bf16.msra.mxu1 %v1610_v49  ;;  %v1687_v48 = vld [vmem:[#allocation7 + $0x3a4] ss:$16 sps:$4 sm:$0xff]   ;;  %v1690_v49 = vld [vmem:[#allocation7 + $0x3ac] ss:$16 sps:$4 sm:$0xff]  }
 0x12c   :  { %1140 = vmatprep.subr.bf16.mxu0 %v1615_v52  ;;  %1222 = vmatprep.subr.bf16.mxu1 %v1618_v53  ;;  %v1688_v52 = vld [vmem:[#allocation7 + $0x3a8] ss:$16 sps:$4 sm:$0xff]   ;;  %v101_v53 = vrot.slane %v1878_v33, %v100_v47 }
 0x12d   :  { %1170 = vmatprep.mubr.bf16.mxu0 %v306_v63  ;;  %1252 = vmatprep.mubr.bf16.mxu1 %v306_v63 }
 0x12f   :  { %1141 = vmatpush1.bf16.msra.mxu0 %v1613_v58  ;;  %1223 = vmatpush1.bf16.msra.mxu1 %v1616_v59  ;;  %v293_v58 = vadd.f32 %v1892_v50, %v101_v53  ;;  %v1702_v59 = vld [vmem:[#allocation7 + $0x3ec] ss:$16 sps:$4 sm:$0xff]   ;;  %v435_v50 = vld [vmem:[%s1916_s4] sm:$0xf] }
 0x130   :  { %1142 = vmatprep.subr.bf16.mxu0 %v1621_v61  ;;  %1224 = vmatprep.subr.bf16.mxu1 %v1624_v62  ;;  %v1700_v61 = vld [vmem:[#allocation7 + $0x3e8] ss:$16 sps:$4 sm:$0xff]   ;;  %v440_v63 = vrot.slane %v435_v50, %v1873_v32 }
 0x131   :  { %v301_v62 = vmax.f32 %v293_v58, 0.0 }
 0x133   :  { %1143 = vmatpush1.bf16.msra.mxu0 %v1619_v0  ;;  %1225 = vmatpush1.bf16.msra.mxu1 %v1622_v1  ;;  %v305_v33 = vpack.c.bf16 %v301_v62, %v301_v62  ;;  %v448_v0 = vrot.slane %v435_v50, %v100_v47  ;;  %v1265_v1 = vld [vmem:[%s1917_s5] sm:$0xf] }
 0x134   :  { %1144 = vmatprep.subr.bf16.mxu0 %v1627_v2  ;;  %1226 = vmatprep.subr.bf16.mxu1 %v1630_v3  ;;  %v444_v2 = vrot.slane %v435_v50, %v1881_v34  ;;  %v452_v3 = vrot.slane %v435_v50, %v1888_v38 }
 0x137   :  { %1145 = vmatpush1.bf16.msra.mxu0 %v1625_v4  ;;  %1227 = vmatpush1.bf16.msra.mxu1 %v1628_v5 }
 0x138   :  { %1146 = vmatprep.subr.bf16.mxu0 %v1633_v6  ;;  %1228 = vmatprep.subr.bf16.mxu1 %v1636_v7  ;;  %v1270_v7 = vrot.slane %v1265_v1, %v1873_v32  ;;  %v1282_v32 = vrot.slane %v1265_v1, %v1888_v38 }
 0x13b   :  { %1147 = vmatpush1.bf16.msra.mxu0 %v1631_v8  ;;  %1229 = vmatpush1.bf16.msra.mxu1 %v1634_v9 }
 0x13c   :  { %1148 = vmatprep.subr.bf16.mxu0 %v1639_v10  ;;  %1230 = vmatprep.subr.bf16.mxu1 %v1642_v11 }
 0x13f   :  { %1149 = vmatpush1.bf16.msra.mxu0 %v1637_v12  ;;  %1231 = vmatpush1.bf16.msra.mxu1 %v1640_v13  ;;  %v1274_v12 = vrot.slane %v1265_v1, %v1881_v34  ;;  %v1464_v34 = vld [vmem:[#allocation2] ss:$0 sm:$0xff] }
 0x140   :  { %1150 = vmatprep.subr.bf16.mxu0 %v1645_v14  ;;  %1232 = vmatprep.subr.bf16.mxu1 %v1648_v15 }
 0x143   :  { %1151 = vmatpush1.bf16.msra.mxu0 %v1643_v16  ;;  %1233 = vmatpush1.bf16.msra.mxu1 %v1646_v17 }
 0x144   :  { %1152 = vmatprep.subr.bf16.mxu0 %v1651_v18  ;;  %1234 = vmatprep.subr.bf16.mxu1 %v1654_v19 }
 0x147   :  { %1153 = vmatpush1.bf16.msra.mxu0 %v1649_v20  ;;  %1235 = vmatpush1.bf16.msra.mxu1 %v1652_v21  ;;  %v1278_v20 = vrot.slane %v1265_v1, %v100_v47 }
 0x148   :  { %1154 = vmatprep.subr.bf16.mxu0 %v1657_v22  ;;  %1236 = vmatprep.subr.bf16.mxu1 %v1660_v23 }
 0x14b   :  { %1155 = vmatpush1.bf16.msra.mxu0 %v1655_v24  ;;  %1237 = vmatpush1.bf16.msra.mxu1 %v1658_v25 }
 0x14c   :  { %1156 = vmatprep.subr.bf16.mxu0 %v1663_v26  ;;  %1238 = vmatprep.subr.bf16.mxu1 %v1666_v27 }
 0x14f   :  { %1157 = vmatpush1.bf16.msra.mxu0 %v1661_v28  ;;  %1239 = vmatpush1.bf16.msra.mxu1 %v1664_v29 }
 0x150   :  { %1158 = vmatprep.subr.bf16.mxu0 %v1669_v30  ;;  %1240 = vmatprep.subr.bf16.mxu1 %v1672_v35 }
 0x153   :  { %1159 = vmatpush1.bf16.msra.mxu0 %v1667_v36  ;;  %1241 = vmatpush1.bf16.msra.mxu1 %v1670_v37 }
 0x154   :  { %1160 = vmatprep.subr.bf16.mxu0 %v1675_v39  ;;  %1242 = vmatprep.subr.bf16.mxu1 %v1678_v40 }
 0x157   :  { %1161 = vmatpush1.bf16.msra.mxu0 %v1673_v41  ;;  %1243 = vmatpush1.bf16.msra.mxu1 %v1676_v42 }
 0x158   :  { %1162 = vmatprep.subr.bf16.mxu0 %v1681_v43  ;;  %1244 = vmatprep.subr.bf16.mxu1 %v1684_v44 }
 0x15b   :  { %1163 = vmatpush1.bf16.msra.mxu0 %v1679_v45  ;;  %1245 = vmatpush1.bf16.msra.mxu1 %v1682_v46 }
 0x15c   :  { %1164 = vmatprep.subr.bf16.mxu0 %v1687_v48  ;;  %1246 = vmatprep.subr.bf16.mxu1 %v1690_v49 }
 0x15f   :  { %1165 = vmatpush1.bf16.msra.mxu0 %v1685_v51  ;;  %1247 = vmatpush1.bf16.msra.mxu1 %v1688_v52 }
 0x160   :  { %1166 = vmatprep.subr.bf16.mxu0 %v1693_v54  ;;  %1248 = vmatprep.subr.bf16.mxu1 %v1696_v55 }
 0x163   :  { %1167 = vmatpush1.bf16.msra.mxu0 %v1691_v56  ;;  %1249 = vmatpush1.bf16.msra.mxu1 %v1694_v57 }
 0x164   :  { %1168 = vmatprep.subr.bf16.mxu0 %v1699_v31  ;;  %1250 = vmatprep.subr.bf16.mxu1 %v1702_v59 }
 0x167   :  { %1169 = vmatpush1.bf16.msra.mxu0 %v1697_v60  ;;  %1251 = vmatpush1.bf16.msra.mxu1 %v1700_v61 }
 0x16a   :  { %1171 = vmatmul.mubr.bf16.vlgmr.msra.gmra.mrb[4].mxu0 %v305_v33  ;;  %1253 = vmatmul.mubr.bf16.vlgmr.msra.gmra.mrb[4].mxu1 %v305_v33 }
 0x23d   :  { %v1172_v4 = vpop.f32.mrb[4].mxu0  ;;  %v1254_v5 = vpop.f32.mrb[4].mxu1 }
 0x23e   :  { %v1465_v6 = vadd.f32 %v1172_v4, %v440_v63  ;;  %v1467_v8 = vadd.f32 %v1254_v5, %v448_v0  ;;  %v1174_v9 = vpop.f32.mrb[5].mxu0  ;;  %v1256_v10 = vpop.f32.mrb[5].mxu1 }
 0x23f   :  { %v1466_v11 = vadd.f32 %v1174_v9, %v444_v2  ;;  %v1468_v13 = vadd.f32 %v1256_v10, %v452_v3  ;;  %v1176_v14 = vpop.f32.mrb[6].mxu0  ;;  %v1258_v15 = vpop.f32.mrb[6].mxu1 }
 0x240   :  { %v1261_v16 = vmax.f32 %v1465_v6, 0.0  ;;  %v1177_v17 = vpop.f32.mrb[7].mxu0  ;;  %v1259_v18 = vpop.f32.mrb[7].mxu1  ;;  %v1263_v19 = vmax.f32 %v1467_v8, 0.0 }
 0x241   :  { %v1262_v21 = vmax.f32 %v1466_v11, 0.0  ;;  %v1264_v24 = vmax.f32 %v1468_v13, 0.0 }
 0x242   :  { %v1287_v22 = vmul.f32 %v1270_v7, %v1261_v16  ;;  %v1289_v25 = vmul.f32 %v1278_v20, %v1263_v19 }
 0x243   :  { %v1288_v23 = vmul.f32 %v1274_v12, %v1262_v21  ;;  %v1290_v27 = vmul.f32 %v1282_v32, %v1264_v24 }
 0x245   :  { %v1291_v26 = vadd.f32 %v1288_v23, %v1287_v22 }
 0x247   :  { %v1292_v28 = vadd.f32 %v1291_v26, %v1289_v25 }
 0x249   :  { %v1293_v29 = vadd.f32 %v1292_v28, %v1290_v27 }
 0x24b   :  { %1294 = vadd.xlane.f32.xlu0 %v1293_v29 }
 0x2d8   :  { %v1295_v30 = vpop.xlane.xlu0 %1294 }
 0x2d9   :  { %v1303_v35 = vadd.f32 %v1464_v34, %v1295_v30 }
 0x2db   :  { %1305 = vst.msk [vmem:[%s1919_s7] sm:$0xff] %vm1304_vm2, %v1303_v35 }
 0x2dc   :  { %1310 = vsyncpa [#allocation4], 1 }
 0x2dd   :  { %1311 = vsyncpa [#allocation6], 1 }

</bundles_post_ra>
